<compile_context>
chip_gen: v7x
topology: tpu7x:2x2x1
jax: 0.10.0
libtpu: 0.0.40
codegen_flags: <defaults>
</compile_context>

<pallas_src>
import math
from functools import partial

import jax
import jax.numpy as jnp
from jax import lax
from jax.experimental import pallas as pl
from jax.experimental.pallas import tpu as pltpu

D_MODEL = 32
N_HEADS = 4
D_K = D_MODEL // N_HEADS


# ----------------------------- fused Pallas kernel -----------------------------

def _mha_kernel(*refs, S_q, S_kv, H, Dk, scale, has_mask):
    if has_mask:
        xq_ref, xk_ref, xv_ref, w_ref, b_ref, mask_ref, o_ref = refs
    else:
        xq_ref, xk_ref, xv_ref, w_ref, b_ref, o_ref = refs
        mask_ref = None

    D = H * Dk

    # One batch element per grid step; keep activations 2-D inside the kernel.
    xq = xq_ref[...].reshape(S_q, D)
    xk = xk_ref[...].reshape(S_kv, D)
    xv = xv_ref[...].reshape(S_kv, D)

    w = w_ref[...]        # (4D, 4D): [0:3D,0:3D]=blockdiag(Wq,Wk,Wv), [3D:,3D:]=Wo
    b = b_ref[...]        # (1, 4D):  bq | bk | bv | bo

    # ---- fused QKV projection (one wide matmul) ---------------------------
    if S_q == S_kv:
        x = jnp.concatenate([xq, xk, xv], axis=-1)                 # (S, 3D)
        qkv = jnp.dot(x, w[: 3 * D, : 3 * D],
                      preferred_element_type=jnp.float32) + b[:, : 3 * D]
        q = qkv[:, :D] * scale          # fold 1/sqrt(d_k) once into Q
        k = qkv[:, D: 2 * D]
        v = qkv[:, 2 * D: 3 * D]
    else:
        # Cross-attention with different sequence lengths: Q alone + fused K|V.
        q = (jnp.dot(xq, w[:D, :D],
                     preferred_element_type=jnp.float32) + b[:, :D]) * scale
        xkv = jnp.concatenate([xk, xv], axis=-1)                   # (S_kv, 2D)
        kv = jnp.dot(xkv, w[D: 3 * D, D: 3 * D],
                     preferred_element_type=jnp.float32) + b[:, D: 3 * D]
        k = kv[:, :D]
        v = kv[:, D:]

    # Mask load + compare hoisted out of the (unrolled) head loop.
    if has_mask:
        masked = mask_ref[...].reshape(S_q, S_kv) == 0             # (S_q, S_kv)
        neg = jnp.float32(-1e9)

    # ---- per-head scaled-dot-product attention ----------------------------
    head_out = []
    for h in range(H):
        lo = h * Dk
        qh = q[:, lo:lo + Dk]                                      # (S_q,  d_k)
        kh = k[:, lo:lo + Dk]                                      # (S_kv, d_k)
        vh = v[:, lo:lo + Dk]                                      # (S_kv, d_k)

        # s = qh @ kh.T without materializing a transpose.
        s = lax.dot_general(qh, kh, (((1,), (1,)), ((), ())),
                            preferred_element_type=jnp.float32)    # (S_q, S_kv)
        if has_mask:
            s = jnp.where(masked, neg, s)   # exact masked_fill(mask==0, -1e9)

        # numerically stable softmax over the last axis
        s = s - jnp.max(s, axis=-1, keepdims=True)
        p = jnp.exp(s)
        p = p * pl.reciprocal(jnp.sum(p, axis=-1, keepdims=True), approx=True)

        head_out.append(jnp.dot(p, vh, preferred_element_type=jnp.float32))

    # Head merge is a lane concat; output projection is ONE K=D matmul.
    o = jnp.concatenate(head_out, axis=-1)                         # (S_q, D)
    out = jnp.dot(o, w[3 * D:, 3 * D:],
                  preferred_element_type=jnp.float32) + b[:, 3 * D:]
    o_ref[...] = out.reshape(1, S_q, D).astype(o_ref.dtype)


# ----------------------------- wrapper -----------------------------

def pack_params(params, d_model=D_MODEL):
    """Pack the four Linear layers into one block weight + one bias row.

    Done ONCE at model-load time (not per forward call):
      w_pack[0:D,0:D]=Wq  [D:2D,D:2D]=Wk  [2D:3D,2D:3D]=Wv  [3D:4D,3D:4D]=Wo
      b_pack = [bq | bk | bv | bo]          (all Ws stored as (in, out))
    """
    D = d_model
    w = jnp.zeros((4 * D, 4 * D), jnp.float32)
    w = w.at[0:D, 0:D].set(params["wq"])
    w = w.at[D:2 * D, D:2 * D].set(params["wk"])
    w = w.at[2 * D:3 * D, 2 * D:3 * D].set(params["wv"])
    w = w.at[3 * D:4 * D, 3 * D:4 * D].set(params["wo"])
    bvec = jnp.concatenate(
        [params["bq"], params["bk"], params["bv"], params["bo"]]).reshape(1, 4 * D)
    return {"w_pack": w, "b_pack": bvec}


def mha_forward(packed, q, k, v, mask=None):
    B, S_q, D = q.shape
    S_kv = k.shape[1]
    assert D == D_MODEL
    assert k.shape == (B, S_kv, D) and v.shape == (B, S_kv, D)

    has_mask = mask is not None

    inputs = [q, k, v, packed["w_pack"], packed["b_pack"]]
    in_specs = [
        pl.BlockSpec((1, S_q, D), lambda i: (i, 0, 0)),
        pl.BlockSpec((1, S_kv, D), lambda i: (i, 0, 0)),
        pl.BlockSpec((1, S_kv, D), lambda i: (i, 0, 0)),
        pl.BlockSpec((4 * D, 4 * D), lambda i: (0, 0)),   # same block every step
        pl.BlockSpec((1, 4 * D), lambda i: (0, 0)),
    ]
    if has_mask:
        # Raw integer mask (broadcast over heads); the -1e9 select is in-kernel.
        m = jnp.broadcast_to(mask, (B, 1, S_q, S_kv)).reshape(B, S_q, S_kv)
        inputs.append(m.astype(jnp.int32))
        in_specs.append(pl.BlockSpec((1, S_q, S_kv), lambda i: (i, 0, 0)))

    kern = partial(_mha_kernel, S_q=S_q, S_kv=S_kv, H=N_HEADS, Dk=D_K,
                   scale=1.0 / math.sqrt(D_K), has_mask=has_mask)

    return pl.pallas_call(
        kern,
        out_shape=jax.ShapeDtypeStruct((B, S_q, D), q.dtype),
        grid=(B,),                    # one batch element per step; on v7x the
        in_specs=in_specs,            # two TensorCores split the batch
        out_specs=pl.BlockSpec((1, S_q, D), lambda i: (i, 0, 0)),
        compiler_params=pltpu.CompilerParams(
            dimension_semantics=("parallel",)),
    )(*inputs)


# ----------------------------- params / reference -----------------------------

def init_params(key, d_model=D_MODEL):
    # Deterministic init mimicking nn.Linear (uniform +/- 1/sqrt(fan_in)).
    bound = 1.0 / math.sqrt(d_model)
    keys = jax.random.split(key, 8)

    def lin(kw, kb):
        w = jax.random.uniform(kw, (d_model, d_model), jnp.float32, -bound, bound)
        bb = jax.random.uniform(kb, (d_model,), jnp.float32, -bound, bound)
        return w, bb  # w stored as (in, out)

    wq, bq = lin(keys[0], keys[1])
    wk, bk = lin(keys[2], keys[3])
    wv, bv = lin(keys[4], keys[5])
    wo, bo = lin(keys[6], keys[7])
    return dict(wq=wq, bq=bq, wk=wk, bk=bk, wv=wv, bv=bv, wo=wo, bo=bo)


def mha_reference(params, q, k, v, mask=None):
    # Pure-JAX reference for sanity checking (matches the PyTorch module intent).
    B, S, D = q.shape

    def lin(x, w, b):
        return x @ w + b

    def split(x):
        return x.reshape(B, x.shape[1], N_HEADS, D_K).transpose(0, 2, 1, 3)

    query = split(lin(q, params["wq"], params["bq"]))
    key = split(lin(k, params["wk"], params["bk"]))
    value = split(lin(v, params["wv"], params["bv"]))
    scores = jnp.einsum("bhqd,bhkd->bhqk", query, key) / math.sqrt(D_K)
    if mask is not None:
        scores = jnp.where(mask == 0, -1e9, scores)
    p = jax.nn.softmax(scores, axis=-1)
    x = jnp.einsum("bhqk,bhkd->bhqd", p, value)
    x = x.transpose(0, 2, 1, 3).reshape(B, S, D)
    return lin(x, params["wo"], params["bo"])


if __name__ == "__main__":
    B, S = 2, 8
    key = jax.random.PRNGKey(0)
    kq, kk, kv, kp = jax.random.split(key, 4)

    q = jax.random.normal(kq, (B, S, D_MODEL), jnp.float32)
    k = jax.random.normal(kk, (B, S, D_MODEL), jnp.float32)
    v = jax.random.normal(kv, (B, S, D_MODEL), jnp.float32)
    # causal mask, broadcast over heads: (B, 1, S, S)
    mask = jnp.tril(jnp.ones((S, S), jnp.int32))[None, None].repeat(B, axis=0)

    params = init_params(kp)
    packed = pack_params(params)   # one-time weight/bias packing (load time)

    out = jax.block_until_ready(mha_forward(packed, q, k, v, mask))
    ref = mha_reference(params, q, k, v, mask)
    assert out.shape == (B, S, D_MODEL)
    # tolerance accommodates the EUP approximate-reciprocal softmax normalization
    assert jnp.allclose(out, ref, atol=5e-3, rtol=5e-3), "mismatch vs JAX reference"

    # also exercise the mask=None fast path (no mask operand at all)
    out_nm = jax.block_until_ready(mha_forward(packed, q, k, v, None))
    ref_nm = mha_reference(params, q, k, v, None)
    assert jnp.allclose(out_nm, ref_nm, atol=5e-3, rtol=5e-3), "mismatch (no mask)"

    print("KERNEL_OK")
</pallas_src>

<mosaic_0001>
module attributes {stable_mosaic.version = 11 : i64} {
  func.func @_mha_kernel(%arg0: i32, %arg1: memref<1x8x32xf32, #tpu.memory_space<vmem>>, %arg2: memref<1x8x32xf32, #tpu.memory_space<vmem>>, %arg3: memref<1x8x32xf32, #tpu.memory_space<vmem>>, %arg4: memref<128x128xf32, #tpu.memory_space<vmem>>, %arg5: memref<1x128xf32, #tpu.memory_space<vmem>>, %arg6: memref<1x8x8xi32, #tpu.memory_space<vmem>>, %arg7: memref<1x8x32xf32, #tpu.memory_space<vmem>>) attributes {dimension_semantics = [#tpu.dimension_semantics<parallel>], iteration_bounds = array<i64: 2>, scalar_prefetch = 0 : i64, scratch_operands = 0 : i64, tpu.core_type = #tpu.core_type<tc>, window_params = [{transform_indices = @transform_0, window_bounds = array<i64: 1, 8, 32>}, {transform_indices = @transform_1, window_bounds = array<i64: 1, 8, 32>}, {transform_indices = @transform_2, window_bounds = array<i64: 1, 8, 32>}, {pipeline_mode = #tpu.pipeline_mode<synchronous>, transform_indices = @transform_3, window_bounds = array<i64: 128, 128>}, {pipeline_mode = #tpu.pipeline_mode<synchronous>, transform_indices = @transform_4, window_bounds = array<i64: 1, 128>}, {transform_indices = @transform_5, window_bounds = array<i64: 1, 8, 8>}, {transform_indices = @transform_6, window_bounds = array<i64: 1, 8, 32>}]} {
    %c0 = arith.constant 0 : index
    %c0_0 = arith.constant 0 : index
    %c0_1 = arith.constant 0 : index
    %0 = vector.load %arg1[%c0, %c0_0, %c0_1] : memref<1x8x32xf32, #tpu.memory_space<vmem>>, vector<1x8x32xf32>
    %1 = vector.shape_cast %0 : vector<1x8x32xf32> to vector<8x32xf32>
    %c0_2 = arith.constant 0 : index
    %c0_3 = arith.constant 0 : index
    %c0_4 = arith.constant 0 : index
    %2 = vector.load %arg2[%c0_2, %c0_3, %c0_4] : memref<1x8x32xf32, #tpu.memory_space<vmem>>, vector<1x8x32xf32>
    %3 = vector.shape_cast %2 : vector<1x8x32xf32> to vector<8x32xf32>
    %c0_5 = arith.constant 0 : index
    %c0_6 = arith.constant 0 : index
    %c0_7 = arith.constant 0 : index
    %4 = vector.load %arg3[%c0_5, %c0_6, %c0_7] : memref<1x8x32xf32, #tpu.memory_space<vmem>>, vector<1x8x32xf32>
    %5 = vector.shape_cast %4 : vector<1x8x32xf32> to vector<8x32xf32>
    %c0_8 = arith.constant 0 : index
    %c0_9 = arith.constant 0 : index
    %6 = vector.load %arg4[%c0_8, %c0_9] : memref<128x128xf32, #tpu.memory_space<vmem>>, vector<128x128xf32>
    %c0_10 = arith.constant 0 : index
    %c0_11 = arith.constant 0 : index
    %7 = vector.load %arg5[%c0_10, %c0_11] : memref<1x128xf32, #tpu.memory_space<vmem>>, vector<1x128xf32>
    %8 = tpu.concatenate %1, %3, %5 in 1 : vector<8x32xf32>, vector<8x32xf32>, vector<8x32xf32> -> vector<8x96xf32>
    %9 = vector.extract_strided_slice %6 {offsets = [0, 0], sizes = [96, 96], strides = [1, 1]} : vector<128x128xf32> to vector<96x96xf32>
    %cst = arith.constant dense<0.000000e+00> : vector<8x96xf32>
    %10 = tpu.matmul %8, %9, %cst {dimension_numbers = #tpu.dot_dimension_numbers<[1], [0], [0], [1], [0, 0, 1, 1], [], []>} : vector<8x96xf32>, vector<96x96xf32>, vector<8x96xf32> -> vector<8x96xf32>
    %11 = vector.extract_strided_slice %7 {offsets = [0, 0], sizes = [1, 96], strides = [1, 1]} : vector<1x128xf32> to vector<1x96xf32>
    %12 = vector.broadcast %11 : vector<1x96xf32> to vector<8x96xf32>
    %13 = arith.addf %10, %12 : vector<8x96xf32>
    %14 = vector.extract_strided_slice %13 {offsets = [0, 0], sizes = [8, 32], strides = [1, 1]} : vector<8x96xf32> to vector<8x32xf32>
    %cst_12 = arith.constant 0.353553385 : f32
    %15 = vector.broadcast %cst_12 : f32 to vector<8x32xf32>
    %16 = arith.mulf %14, %15 : vector<8x32xf32>
    %17 = vector.extract_strided_slice %13 {offsets = [0, 32], sizes = [8, 32], strides = [1, 1]} : vector<8x96xf32> to vector<8x32xf32>
    %18 = vector.extract_strided_slice %13 {offsets = [0, 64], sizes = [8, 32], strides = [1, 1]} : vector<8x96xf32> to vector<8x32xf32>
    %c0_13 = arith.constant 0 : index
    %c0_14 = arith.constant 0 : index
    %c0_15 = arith.constant 0 : index
    %19 = vector.load %arg6[%c0_13, %c0_14, %c0_15] : memref<1x8x8xi32, #tpu.memory_space<vmem>>, vector<1x8x8xi32>
    %20 = vector.shape_cast %19 : vector<1x8x8xi32> to vector<8x8xi32>
    %c0_i32 = arith.constant 0 : i32
    %21 = vector.broadcast %c0_i32 : i32 to vector<8x8xi32>
    %22 = arith.cmpi eq, %20, %21 : vector<8x8xi32>
    %23 = vector.extract_strided_slice %16 {offsets = [0, 0], sizes = [8, 8], strides = [1, 1]} : vector<8x32xf32> to vector<8x8xf32>
    %24 = vector.extract_strided_slice %17 {offsets = [0, 0], sizes = [8, 8], strides = [1, 1]} : vector<8x32xf32> to vector<8x8xf32>
    %25 = vector.extract_strided_slice %18 {offsets = [0, 0], sizes = [8, 8], strides = [1, 1]} : vector<8x32xf32> to vector<8x8xf32>
    %cst_16 = arith.constant dense<0.000000e+00> : vector<8x8xf32>
    %26 = tpu.matmul %23, %24, %cst_16 {dimension_numbers = #tpu.dot_dimension_numbers<[1], [1], [0], [0], [0, 0, 1, 0], [], []>} : vector<8x8xf32>, vector<8x8xf32>, vector<8x8xf32> -> vector<8x8xf32>
    %cst_17 = arith.constant -1.000000e+09 : f32
    %27 = vector.broadcast %cst_17 : f32 to vector<8x8xf32>
    %28 = arith.select %22, %27, %26 : vector<8x8xi1>, vector<8x8xf32>
    %cst_18 = arith.constant dense<0xFF800000> : vector<8xf32>
    %29 = vector.multi_reduction <maximumf>, %28, %cst_18 [1] : vector<8x8xf32> to vector<8xf32>
    %30 = vector.shape_cast %29 : vector<8xf32> to vector<8x1xf32>
    %31 = vector.broadcast %30 : vector<8x1xf32> to vector<8x8xf32>
    %32 = arith.subf %28, %31 : vector<8x8xf32>
    %33 = math.exp %32 : vector<8x8xf32>
    %cst_19 = arith.constant dense<0.000000e+00> : vector<8xf32>
    %34 = vector.multi_reduction <add>, %33, %cst_19 [1] : vector<8x8xf32> to vector<8xf32>
    %35 = vector.shape_cast %34 : vector<8xf32> to vector<8x1xf32>
    %36 = tpu.reciprocal %35 {approx = true} : vector<8x1xf32> -> vector<8x1xf32>
    %37 = vector.broadcast %36 : vector<8x1xf32> to vector<8x8xf32>
    %38 = arith.mulf %33, %37 : vector<8x8xf32>
    %cst_20 = arith.constant dense<0.000000e+00> : vector<8x8xf32>
    %39 = tpu.matmul %38, %25, %cst_20 {dimension_numbers = #tpu.dot_dimension_numbers<[1], [0], [0], [1], [0, 0, 1, 1], [], []>} : vector<8x8xf32>, vector<8x8xf32>, vector<8x8xf32> -> vector<8x8xf32>
    %40 = vector.extract_strided_slice %16 {offsets = [0, 8], sizes = [8, 8], strides = [1, 1]} : vector<8x32xf32> to vector<8x8xf32>
    %41 = vector.extract_strided_slice %17 {offsets = [0, 8], sizes = [8, 8], strides = [1, 1]} : vector<8x32xf32> to vector<8x8xf32>
    %42 = vector.extract_strided_slice %18 {offsets = [0, 8], sizes = [8, 8], strides = [1, 1]} : vector<8x32xf32> to vector<8x8xf32>
    %cst_21 = arith.constant dense<0.000000e+00> : vector<8x8xf32>
    %43 = tpu.matmul %40, %41, %cst_21 {dimension_numbers = #tpu.dot_dimension_numbers<[1], [1], [0], [0], [0, 0, 1, 0], [], []>} : vector<8x8xf32>, vector<8x8xf32>, vector<8x8xf32> -> vector<8x8xf32>
    %cst_22 = arith.constant -1.000000e+09 : f32
    %44 = vector.broadcast %cst_22 : f32 to vector<8x8xf32>
    %45 = arith.select %22, %44, %43 : vector<8x8xi1>, vector<8x8xf32>
    %cst_23 = arith.constant dense<0xFF800000> : vector<8xf32>
    %46 = vector.multi_reduction <maximumf>, %45, %cst_23 [1] : vector<8x8xf32> to vector<8xf32>
    %47 = vector.shape_cast %46 : vector<8xf32> to vector<8x1xf32>
    %48 = vector.broadcast %47 : vector<8x1xf32> to vector<8x8xf32>
    %49 = arith.subf %45, %48 : vector<8x8xf32>
    %50 = math.exp %49 : vector<8x8xf32>
    %cst_24 = arith.constant dense<0.000000e+00> : vector<8xf32>
    %51 = vector.multi_reduction <add>, %50, %cst_24 [1] : vector<8x8xf32> to vector<8xf32>
    %52 = vector.shape_cast %51 : vector<8xf32> to vector<8x1xf32>
    %53 = tpu.reciprocal %52 {approx = true} : vector<8x1xf32> -> vector<8x1xf32>
    %54 = vector.broadcast %53 : vector<8x1xf32> to vector<8x8xf32>
    %55 = arith.mulf %50, %54 : vector<8x8xf32>
    %cst_25 = arith.constant dense<0.000000e+00> : vector<8x8xf32>
    %56 = tpu.matmul %55, %42, %cst_25 {dimension_numbers = #tpu.dot_dimension_numbers<[1], [0], [0], [1], [0, 0, 1, 1], [], []>} : vector<8x8xf32>, vector<8x8xf32>, vector<8x8xf32> -> vector<8x8xf32>
    %57 = vector.extract_strided_slice %16 {offsets = [0, 16], sizes = [8, 8], strides = [1, 1]} : vector<8x32xf32> to vector<8x8xf32>
    %58 = vector.extract_strided_slice %17 {offsets = [0, 16], sizes = [8, 8], strides = [1, 1]} : vector<8x32xf32> to vector<8x8xf32>
    %59 = vector.extract_strided_slice %18 {offsets = [0, 16], sizes = [8, 8], strides = [1, 1]} : vector<8x32xf32> to vector<8x8xf32>
    %cst_26 = arith.constant dense<0.000000e+00> : vector<8x8xf32>
    %60 = tpu.matmul %57, %58, %cst_26 {dimension_numbers = #tpu.dot_dimension_numbers<[1], [1], [0], [0], [0, 0, 1, 0], [], []>} : vector<8x8xf32>, vector<8x8xf32>, vector<8x8xf32> -> vector<8x8xf32>
    %cst_27 = arith.constant -1.000000e+09 : f32
    %61 = vector.broadcast %cst_27 : f32 to vector<8x8xf32>
    %62 = arith.select %22, %61, %60 : vector<8x8xi1>, vector<8x8xf32>
    %cst_28 = arith.constant dense<0xFF800000> : vector<8xf32>
    %63 = vector.multi_reduction <maximumf>, %62, %cst_28 [1] : vector<8x8xf32> to vector<8xf32>
    %64 = vector.shape_cast %63 : vector<8xf32> to vector<8x1xf32>
    %65 = vector.broadcast %64 : vector<8x1xf32> to vector<8x8xf32>
    %66 = arith.subf %62, %65 : vector<8x8xf32>
    %67 = math.exp %66 : vector<8x8xf32>
    %cst_29 = arith.constant dense<0.000000e+00> : vector<8xf32>
    %68 = vector.multi_reduction <add>, %67, %cst_29 [1] : vector<8x8xf32> to vector<8xf32>
    %69 = vector.shape_cast %68 : vector<8xf32> to vector<8x1xf32>
    %70 = tpu.reciprocal %69 {approx = true} : vector<8x1xf32> -> vector<8x1xf32>
    %71 = vector.broadcast %70 : vector<8x1xf32> to vector<8x8xf32>
    %72 = arith.mulf %67, %71 : vector<8x8xf32>
    %cst_30 = arith.constant dense<0.000000e+00> : vector<8x8xf32>
    %73 = tpu.matmul %72, %59, %cst_30 {dimension_numbers = #tpu.dot_dimension_numbers<[1], [0], [0], [1], [0, 0, 1, 1], [], []>} : vector<8x8xf32>, vector<8x8xf32>, vector<8x8xf32> -> vector<8x8xf32>
    %74 = vector.extract_strided_slice %16 {offsets = [0, 24], sizes = [8, 8], strides = [1, 1]} : vector<8x32xf32> to vector<8x8xf32>
    %75 = vector.extract_strided_slice %17 {offsets = [0, 24], sizes = [8, 8], strides = [1, 1]} : vector<8x32xf32> to vector<8x8xf32>
    %76 = vector.extract_strided_slice %18 {offsets = [0, 24], sizes = [8, 8], strides = [1, 1]} : vector<8x32xf32> to vector<8x8xf32>
    %cst_31 = arith.constant dense<0.000000e+00> : vector<8x8xf32>
    %77 = tpu.matmul %74, %75, %cst_31 {dimension_numbers = #tpu.dot_dimension_numbers<[1], [1], [0], [0], [0, 0, 1, 0], [], []>} : vector<8x8xf32>, vector<8x8xf32>, vector<8x8xf32> -> vector<8x8xf32>
    %cst_32 = arith.constant -1.000000e+09 : f32
    %78 = vector.broadcast %cst_32 : f32 to vector<8x8xf32>
    %79 = arith.select %22, %78, %77 : vector<8x8xi1>, vector<8x8xf32>
    %cst_33 = arith.constant dense<0xFF800000> : vector<8xf32>
    %80 = vector.multi_reduction <maximumf>, %79, %cst_33 [1] : vector<8x8xf32> to vector<8xf32>
    %81 = vector.shape_cast %80 : vector<8xf32> to vector<8x1xf32>
    %82 = vector.broadcast %81 : vector<8x1xf32> to vector<8x8xf32>
    %83 = arith.subf %79, %82 : vector<8x8xf32>
    %84 = math.exp %83 : vector<8x8xf32>
    %cst_34 = arith.constant dense<0.000000e+00> : vector<8xf32>
    %85 = vector.multi_reduction <add>, %84, %cst_34 [1] : vector<8x8xf32> to vector<8xf32>
    %86 = vector.shape_cast %85 : vector<8xf32> to vector<8x1xf32>
    %87 = tpu.reciprocal %86 {approx = true} : vector<8x1xf32> -> vector<8x1xf32>
    %88 = vector.broadcast %87 : vector<8x1xf32> to vector<8x8xf32>
    %89 = arith.mulf %84, %88 : vector<8x8xf32>
    %cst_35 = arith.constant dense<0.000000e+00> : vector<8x8xf32>
    %90 = tpu.matmul %89, %76, %cst_35 {dimension_numbers = #tpu.dot_dimension_numbers<[1], [0], [0], [1], [0, 0, 1, 1], [], []>} : vector<8x8xf32>, vector<8x8xf32>, vector<8x8xf32> -> vector<8x8xf32>
    %91 = tpu.concatenate %39, %56, %73, %90 in 1 : vector<8x8xf32>, vector<8x8xf32>, vector<8x8xf32>, vector<8x8xf32> -> vector<8x32xf32>
    %92 = vector.extract_strided_slice %6 {offsets = [96, 96], sizes = [32, 32], strides = [1, 1]} : vector<128x128xf32> to vector<32x32xf32>
    %cst_36 = arith.constant dense<0.000000e+00> : vector<8x32xf32>
    %93 = tpu.matmul %91, %92, %cst_36 {dimension_numbers = #tpu.dot_dimension_numbers<[1], [0], [0], [1], [0, 0, 1, 1], [], []>} : vector<8x32xf32>, vector<32x32xf32>, vector<8x32xf32> -> vector<8x32xf32>
    %94 = vector.extract_strided_slice %7 {offsets = [0, 96], sizes = [1, 32], strides = [1, 1]} : vector<1x128xf32> to vector<1x32xf32>
    %95 = vector.broadcast %94 : vector<1x32xf32> to vector<8x32xf32>
    %96 = arith.addf %93, %95 : vector<8x32xf32>
    %97 = vector.shape_cast %96 : vector<8x32xf32> to vector<1x8x32xf32>
    %c0_37 = arith.constant 0 : index
    %c0_38 = arith.constant 0 : index
    %c0_39 = arith.constant 0 : index
    %98 = vector.load %arg7[%c0_37, %c0_38, %c0_39] : memref<1x8x32xf32, #tpu.memory_space<vmem>>, vector<1x8x32xf32>
    tpu.vector_store %arg7[%c0_37, %c0_38, %c0_39], %97 {strides = array<i32>} : memref<1x8x32xf32, #tpu.memory_space<vmem>>, vector<1x8x32xf32>,
    return
  }
  func.func @transform_0(%arg0: i32) -> (i32, i32, i32) {
    %c0_i32 = arith.constant 0 : i32
    %c0_i32_0 = arith.constant 0 : i32
    %c0_i32_1 = arith.constant 0 : i32
    return %arg0, %c0_i32, %c0_i32_0 : i32, i32, i32
  }
  func.func @transform_1(%arg0: i32) -> (i32, i32, i32) {
    %c0_i32 = arith.constant 0 : i32
    %c0_i32_0 = arith.constant 0 : i32
    %c0_i32_1 = arith.constant 0 : i32
    return %arg0, %c0_i32, %c0_i32_0 : i32, i32, i32
  }
  func.func @transform_2(%arg0: i32) -> (i32, i32, i32) {
    %c0_i32 = arith.constant 0 : i32
    %c0_i32_0 = arith.constant 0 : i32
    %c0_i32_1 = arith.constant 0 : i32
    return %arg0, %c0_i32, %c0_i32_0 : i32, i32, i32
  }
  func.func @transform_3(%arg0: i32) -> (i32, i32) {
    %c0_i32 = arith.constant 0 : i32
    %c0_i32_0 = arith.constant 0 : i32
    %c0_i32_1 = arith.constant 0 : i32
    return %c0_i32, %c0_i32_0 : i32, i32
  }
  func.func @transform_4(%arg0: i32) -> (i32, i32) {
    %c0_i32 = arith.constant 0 : i32
    %c0_i32_0 = arith.constant 0 : i32
    %c0_i32_1 = arith.constant 0 : i32
    return %c0_i32, %c0_i32_0 : i32, i32
  }
  func.func @transform_5(%arg0: i32) -> (i32, i32, i32) {
    %c0_i32 = arith.constant 0 : i32
    %c0_i32_0 = arith.constant 0 : i32
    %c0_i32_1 = arith.constant 0 : i32
    return %arg0, %c0_i32, %c0_i32_0 : i32, i32, i32
  }
  func.func @transform_6(%arg0: i32) -> (i32, i32, i32) {
    %c0_i32 = arith.constant 0 : i32
    %c0_i32_0 = arith.constant 0 : i32
    %c0_i32_1 = arith.constant 0 : i32
    return %arg0, %c0_i32, %c0_i32_0 : i32, i32, i32
  }
}

</mosaic_0001>

<bundles_post_ra>
// kernel: tpu_custom_call.1
= control target key start
LH: loop header
LB: loop body
LE: loop exit
PB: predicated region body
PF: predicated region fallthrough
CT: control target
= control target key end

     0   :  { %s2344_s0 = inlined_call_operand.hbm [shape: f32[2,8,32], index: 0, kind: input, shape index: {}]   ;;  %s2345_s1 = inlined_call_operand.hbm [shape: f32[2,8,32], index: 1, kind: input, shape index: {}]   ;;  %s2346_s2 = inlined_call_operand.hbm [shape: f32[2,8,32], index: 2, kind: input, shape index: {}]   ;;  %s2347_s3 = inlined_call_operand.hbm [shape: f32[128,128], index: 3, kind: input, shape index: {}]   ;;  %s2348_s4 = inlined_call_operand.vmem [shape: f32[1,128], index: 4, kind: input, shape index: {}]   ;;  %s2349_s5 = inlined_call_operand.vmem [shape: s32[2,8,8], index: 5, kind: input, shape index: {}]   ;;  %s2350_s6 = inlined_call_operand.hbm [shape: f32[2,8,32], index: 6, kind: output, shape index: {}]  }
   0x1   :  { %2369 = sst [smem:[#allocation21_spill]] %s2345_s1 }
   0x2   :  { %2370 = sst [smem:[#allocation22_spill]] %s2350_s6 }
   0x3   :  { %11 = vsyncpa [#allocation3], 0 }
   0x4   :  { %13 = vsyncpa [#allocation3 + $0x1], 0 }
   0x5   :  { %14 = vsyncpa [#allocation6], 0 }
   0x6   :  { %16 = vsyncpa [#allocation6 + $0x1], 0 }
   0x7   :  { %17 = vsyncpa [#allocation9], 0 }
   0x8   :  { %18 = vsyncpa [#allocation4], 0 }
   0x9   :  { %20 = vsyncpa [#allocation4 + $0x1], 0  ;;  %s1948_s21 = smov 0   ;;  %s1950_s22 = smov 0  }
   0xa   :  { %s1952_s23 = smov 0   ;;  %s1954_s24 = smov 0  }
   0xb LB: > { %2371 = sst [smem:[#allocation15_spill]] %s1874_s21  ;;  %s1969_s25 = sadd.s32 1, %s1886_s24   ;;  %s1886_s24 = sphi %s1954_s24, %s2402_s24   ;;  %s1882_s23 = sphi %s1952_s23, %s2406_s23   ;;  %s1878_s22 = sphi %s1950_s22, %s2405_s22   ;;  %s1874_s21 = sphi %s1948_s21, %s2404_s21  }
   0xc   : > { %2372 = sst [smem:[#allocation16_spill]] %s1886_s24  ;;  %s33_s26 = sadd.s32 1, %s1882_s23 }
   0xd   : > { %2373 = sst [smem:[#allocation17_spill]] %s1969_s25  ;;  %s30_s27 = ssub.s32 %s1886_s24, %s1969_s25 }
   0xe   : > { %p2351_p0 = scmp.ne.s32.totalorder %s1882_s23, %s1878_s22  ;;  %p31_p1 = scmp.eq.s32.totalorder %s30_s27, 0 }
   0xf   : > { %p41_p2 = scmp.eq.s32.totalorder %s1886_s24, 0  ;;  %p1612_p4 = scmp.lt.s32.totalorder %s1886_s24, 2 }
  0x10   : > { %s1980_s28 = scalar_select %p31_p1, %s1882_s23, %s33_s26  }
  0x11   : > { %p42_p5 = por %p41_p2, %p2351_p0  ;;  %s2352_s29 = sand.u32 1, %s1882_s23  }
  0x12   : > { %2374 = sst [smem:[#allocation18_spill]] %s1980_s28  ;;  %s1988_s30 = sshll.u32 %s2352_s29, 3 }
  0x13   : > { %s1991_s7 = sshll.u32 %s1886_s24, 7  ;;  %p1993_p6 = pnand %p1612_p4, %p42_p5 }
  0x14   : > { %s250_s9 = sand.u32 1, %s1886_s24   ;;  %s2376_s1 = sld [smem:[#allocation21_spill]] }
  0x15   : > { %s2375_s8 = scalar_select %p1993_p6, 1, 0 }
  0x16   : > { %s254_s13 = scalar_lea.vmem [#allocation5], %s1988_s30  ;;  %s2007_s15 = scalar_lea.sflag [#allocation6], %s250_s9 }
  0x17   : > { %s261_s14 = sshll.u32 %s254_s13, 4  ;;  %p2013_p8 = pneg %p1993_p6  ;;  %s2005_s14 = int_to_ptr.vmem [resolvable:$true] %s261_s14 }
  0x19   : > { %s2377_s17 = scalar_select %p2013_p8, 1, 0 }
  0x1a   : > { %s2002_s12 = scalar_lea.hbm %s2376_s1, %s1991_s7  ;;  %s1699_s20 = scalar_lea.hbm %s2376_s1, 256 }
  0x1b   : > { %s1694_s16 = scalar_lea.hbm %s2002_s12, 128  ;;  %p1700_p11 = scmp.lt.u32.totalorder %s2002_s12, %s2376_s1 }
  0x1c   : > { %p1695_p7 = scmp.ne.s32.totalorder %s2002_s12, %s1694_s16  ;;  %p1701_p12 = scmp.lt.u32.totalorder %s1699_s20, %s1694_s16 }
  0x1d   : > { %p1703_p1 = scmp.lt.u32.totalorder %s1694_s16, %s2002_s12 }
  0x1e   : > { %p1697_p9 = pnand %p2013_p8, %p1695_p7  ;;  %p1702_p13 = por %p1701_p12, %p1700_p11 }
  0x20   : > { %p1698_p10 = pneg %p1697_p9  ;;  %p1704_p2 = por %p1703_p1, %p1702_p13 }
  0x22   : > { %p1705_p4 = pnand %p1704_p2, %p1698_p10 }
  0x24   : > { %1708 = shalt.err (!%p1705_p4)
}
  0x25   : > { %s1709_s9 = scalar_lea.vmem %s2005_s14, 128  ;;  %s1888_s10 = smov [#allocation5]  }
  0x26   : > { %p1710_p5 = scmp.ne.s32.totalorder %s2005_s14, %s1709_s9  ;;  %s1714_s11 = sshll.u32 %s1888_s10, 4  ;;  %s1715_s11 = int_to_ptr.vmem [resolvable:$false] %s1714_s11 }
  0x27   : > { %s1716_s13 = scalar_lea.vmem %s1715_s11, 256  ;;  %p1717_p3 = scmp.lt.s32.totalorder %s2005_s14, %s1715_s11 }
  0x28   : > { %p1712_p7 = pnand %p1710_p5, %p2013_p8  ;;  %p1718_p0 = scmp.lt.s32.totalorder %s1716_s13, %s1709_s9 }
  0x2a   : > { %p1713_p9 = pneg %p1712_p7  ;;  %p1719_p11 = por %p1718_p0, %p1717_p3 }
  0x2c   : > { %p1720_p12 = pnand %p1719_p11, %p1713_p9 }
  0x2e   : > { %1723 = shalt.err (!%p1720_p12)
}
  0x2f   : > { %1603 = dma.hbm_to_vmem [thread:$0]  (!%p1993_p6), %s2002_s12, 128, %s2005_s14, %s2007_s15  }
  0x30   : > { %s2038_s16 = sadd.s32 4294967295, %s1886_s24   ;;  %s1409_s18 = sadd.s32 4294967294, %s1886_s24  }
  0x31   : > { %p46_p0 = scmp.ne.s32.totalorder %s1878_s22, %s1874_s21  ;;  %p2358_p3 = scmp.eq.s32.totalorder %s2038_s16, 0 }
  0x32   : > { %p190_p10 = scmp.eq.s32.totalorder %s2038_s16, 1  ;;  %p196_p13 = scmp.eq.s32.totalorder %s1409_s18, 1 }
  0x33   : > { %p2047_p1 = por %p2358_p3, %p46_p0  ;;  %p1410_p2 = scmp.ge.s32.totalorder %s1886_s24, 1 }
  0x34   : > { %p2379_p4 = scmp.ne.s32.totalorder %s1882_s23, %s1878_s22  ;;  %p2059_p7 = por %p196_p13, %p46_p0 }
  0x35   : > { %s2378_s19 = scalar_select %p2047_p1, 1, 0 }
  0x36   : > { %p2055_p5 = por %p190_p10, %p2379_p4  ;;  %p203_p9 = scmp.lt.s32.totalorder %s1886_s24, 3 }
  0x37   : > { %s2382_s14 = scalar_select %p2059_p7, 1, 0 }
  0x38   : > { %s2380_s12 = scalar_select %p2055_p5, 1, 0 }
  0x39   : > { %2383 = sst [smem:[#allocation20_spill]] %s2382_s14  ;;  %p2064_p11 = pnand %p1410_p2, %p203_p9 }
  0x3a   : > { %2381 = sst [smem:[#allocation19_spill]] %s2380_s12  ;;  %s1889_s26 = smov [#allocation8]  }
  0x3b   : > { %s2384_s20 = scalar_select %p2064_p11, 1, 0 }
  0x3c   : > { %s215_s27 = sshll.u32 %s1889_s26, 4  ;;  %p1593_p12 = pneg %p2064_p11  ;;  %s2068_s27 = int_to_ptr.vmem [resolvable:$true] %s215_s27 }
  0x3d   : > { %s2076_s11 = scalar_lea.hbm %s2344_s0, %s1991_s7  ;;  %s236_s18 = scalar_lea.vmem [#allocation2], %s1988_s30 }
  0x3e   : > { %p2080_p0 = pnand %p1593_p12, %p2358_p3  ;;  %s243_s29 = sshll.u32 %s236_s18, 4  ;;  %s2085_s29 = int_to_ptr.vmem [resolvable:$true] %s243_s29 }
  0x3f   : > { %s2091_s28 = scalar_lea.hbm %s2346_s2, %s1991_s7  ;;  %s1724_s9 = scalar_lea.hbm %s2347_s3, 2048 }
  0x40   : > { %p1725_p10 = scmp.ne.s32.totalorder %s2347_s3, %s1724_s9  ;;  %p1726_p13 = pneg %p2080_p0 }
  0x41   : > { %p1731_p9 = scmp.lt.u32.totalorder %s1724_s9, %s2347_s3 }
  0x42   : > { %p1727_p2 = pnand %p1726_p13, %p1725_p10 }
  0x44   : > { %p1728_p4 = pneg %p1727_p2 }
  0x46   : > { %p1733_p12 = pnand %p1731_p9, %p1728_p4 }
  0x48   : > { %1736 = shalt.err (!%p1733_p12)
}
  0x49   : > { %s1737_s1 = scalar_lea.vmem %s2068_s27, 2048  ;;  %p1745_p1 = scmp.lt.s32.totalorder %s2068_s27, %s2068_s27 }
  0x4a   : > { %p1738_p3 = scmp.ne.s32.totalorder %s2068_s27, %s1737_s1  ;;  %p1746_p11 = scmp.lt.s32.totalorder %s1737_s1, %s1737_s1 }
  0x4c   : > { %p1740_p7 = pnand %p1738_p3, %p1726_p13  ;;  %p1747_p6 = por %p1746_p11, %p1745_p1 }
  0x4e   : > { %p1741_p5 = pneg %p1740_p7 }
  0x50   : > { %p1748_p8 = pnand %p1747_p6, %p1741_p5 }
  0x52   : > { %1751 = shalt.err (!%p1748_p8)
}
  0x53   : > { %s1890_s24 = smov 128   ;;  %s1891_s21 = smov 8  }
  0x54   : > { %1596 = dma.hbm_to_vmem [thread:$0]  (!%p2080_p0), %s2347_s3, 2048, %s2068_s27, [#allocation9], %s1890_s24, %s1890_s24, %s1891_s21  }
  0x55   : > { %s2386_s14 = sand.u32 1, %s1882_s23   ;;  %s1752_s9 = scalar_lea.hbm %s2076_s11, 128 }
  0x56   : > { %s233_s26 = scalar_lea.sflag [#allocation3], %s2386_s14  ;;  %p1753_p6 = scmp.ne.s32.totalorder %s2076_s11, %s1752_s9 }
  0x57   : > { %p2387_p8 = scmp.ne.s32.totalorder %s2377_s17, 0  ;;  %s1757_s1 = scalar_lea.hbm %s2344_s0, 256 }
  0x58   : > { %p1758_p5 = scmp.lt.u32.totalorder %s2076_s11, %s2344_s0  ;;  %p1759_p7 = scmp.lt.u32.totalorder %s1757_s1, %s1752_s9 }
  0x59   : > { %p1755_p3 = pnand %p1753_p6, %p2387_p8  ;;  %p1761_p10 = scmp.lt.u32.totalorder %s1752_s9, %s2076_s11 }
  0x5a   : > { %p1760_p11 = por %p1759_p7, %p1758_p5 }
  0x5b   : > { %p1756_p1 = pneg %p1755_p3 }
  0x5c   : > { %p1762_p13 = por %p1761_p10, %p1760_p11 }
  0x5e   : > { %p1763_p0 = pnand %p1762_p13, %p1756_p1 }
  0x60   : > { %1766 = shalt.err (!%p1763_p0)
}
  0x61   : > { %s1767_s27 = scalar_lea.vmem %s2085_s29, 128  ;;  %s1892_s13 = smov [#allocation2]  }
  0x62   : > { %p1768_p2 = scmp.ne.s32.totalorder %s2085_s29, %s1767_s27  ;;  %s1772_s24 = sshll.u32 %s1892_s13, 4  ;;  %s1773_s24 = int_to_ptr.vmem [resolvable:$false] %s1772_s24 }
  0x63   : > { %s1774_s6 = scalar_lea.vmem %s1773_s24, 256  ;;  %p1775_p12 = scmp.lt.s32.totalorder %s2085_s29, %s1773_s24 }
  0x64   : > { %p1770_p4 = pnand %p1768_p2, %p2387_p8  ;;  %p1776_p6 = scmp.lt.s32.totalorder %s1774_s6, %s1767_s27 }
  0x66   : > { %p1771_p9 = pneg %p1770_p4  ;;  %p1777_p3 = por %p1776_p6, %p1775_p12 }
  0x68   : > { %p1778_p5 = pnand %p1777_p3, %p1771_p9 }
  0x6a   : > { %1781 = shalt.err (!%p1778_p5)
}
  0x6b   : > { %p2388_p1 = scmp.ne.s32.totalorder %s2375_s8, 0  ;;  %s272_s12 = scalar_lea.vmem [#allocation7], %s1988_s30 }
  0x6c   : > { %s279_s21 = sshll.u32 %s272_s12, 4  ;;  %s1782_s25 = scalar_lea.hbm %s2091_s28, 128  ;;  %s280_s21 = int_to_ptr.vmem [resolvable:$true] %s279_s21 }
  0x6d   : > { %1600 = dma.hbm_to_vmem [thread:$0]  (!%p2388_p1), %s2076_s11, 128, %s2085_s29, %s233_s26  }
  0x6e   : > { %p1783_p7 = scmp.ne.s32.totalorder %s2091_s28, %s1782_s25  ;;  %s1787_s9 = scalar_lea.hbm %s2346_s2, 256 }
  0x6f   : > { %p1788_p13 = scmp.lt.u32.totalorder %s2091_s28, %s2346_s2  ;;  %p1789_p0 = scmp.lt.u32.totalorder %s1787_s9, %s1782_s25 }
  0x70   : > { %p1785_p11 = pnand %p1783_p7, %p2387_p8  ;;  %p1791_p4 = scmp.lt.u32.totalorder %s1782_s25, %s2091_s28 }
  0x71   : > { %p1790_p2 = por %p1789_p0, %p1788_p13 }
  0x72   : > { %p1786_p10 = pneg %p1785_p11 }
  0x73   : > { %p1792_p9 = por %p1791_p4, %p1790_p2 }
  0x75   : > { %p1793_p12 = pnand %p1792_p9, %p1786_p10 }
  0x77   : > { %1796 = shalt.err (!%p1793_p12)
}
  0x78   : > { %s1797_s29 = scalar_lea.vmem %s280_s21, 128  ;;  %s1893_s30 = smov [#allocation7]  }
  0x79   : > { %p1798_p6 = scmp.ne.s32.totalorder %s280_s21, %s1797_s29  ;;  %s1802_s11 = sshll.u32 %s1893_s30, 4  ;;  %s1803_s11 = int_to_ptr.vmem [resolvable:$false] %s1802_s11 }
  0x7a   : > { %s1804_s26 = scalar_lea.vmem %s1803_s11, 256  ;;  %p1805_p7 = scmp.lt.s32.totalorder %s280_s21, %s1803_s11 }
  0x7b   : > { %p1800_p3 = pnand %p1798_p6, %p2387_p8  ;;  %p1806_p11 = scmp.lt.s32.totalorder %s1804_s26, %s1797_s29 }
  0x7d   : > { %p1801_p5 = pneg %p1800_p3  ;;  %p1807_p1 = por %p1806_p11, %p1805_p7 }
  0x7f   : > { %p1808_p0 = pnand %p1807_p1, %p1801_p5 }
  0x81   : > { %1811 = shalt.err (!%p1808_p0)
}
  0x82   : > { %p2389_p13 = scmp.ne.s32.totalorder %s2375_s8, 0  ;;  %p2390_p10 = scmp.ne.s32.totalorder %s2384_s20, 0 }
  0x83   : > { %s2159_s17 = sand.u32 (!%p2390_p10), 1, %s1878_s22   ;;  %p2391_p8 = scmp.ne.s32.totalorder (!%p2390_p10), %s2378_s19, 0 }
  0x84   : > { %1606 = dma.hbm_to_vmem [thread:$0]  (!%p2389_p13), %s2091_s28, 128, %s280_s21, %s2007_s15  }
  0x85   : > { %295 = sbr.rel (%p2390_p10) target bundleno = 3278 (0xcce), region = 44  ;;  %s2162_s1 = sshll.u32 (!%p2390_p10), %s2159_s17, 3 }
  0x86   : > { %s298_s27 = scalar_lea.sflag (!%p2390_p10), [#allocation3], %s2159_s17  ;;  %s301_s13 = scalar_lea.vmem (!%p2390_p10), [#allocation2], %s2162_s1 }
  0x8c   : > { %1857 = dma.done.wait (%p2391_p8), %s298_s27, 128  }
  0x8d   : > { %1859 = vsyncadd (%p2391_p8), %s298_s27, 4294967168  ;;  %s306_s28 = sand.u32 1, %s2038_s16   ;;  %s310_s15 = scalar_lea.vmem [#allocation5], %s2162_s1 }
  0x8e   : > { %s307_s8 = scalar_lea.sflag [#allocation6], %s306_s28 }
  0x8f   : > { %1861 = dma.done.wait (%p2391_p8), %s307_s8, 256  }
  0x90   : > { %1863 = vsyncadd (%p2391_p8), %s307_s8, 4294967040  ;;  %s319_s20 = scalar_lea.vmem [#allocation7], %s2162_s1  ;;  %p2392_p1 = scmp.eq.s32.totalorder %s2038_s16, 0 }
  0x92   : > { %1865 = dma.done.wait (%p2392_p1), [#allocation9], 2048   ;;  %p2393_p2 = pmov %p2392_p1 }
  0x93   : > { %v1894_v0 = vmov 0.0|0.0   ;;  %vm1895_vm0 = vmmov 0   ;;  %v1896_v1 = vmov 0.0   ;;  %v371_v2 = vld [vmem:[%s310_s15] sm:$0xff]  ;;  %s1897_s19 = smov 32   ;;  %v375_v5 = vld [vmem:[#allocation8 + $0x10] sm:$0xff] }
  0x94   : > { %1867 = vsyncadd (%p2393_p2), [#allocation9], 4294965248  ;;  %1557 = vmatprep.subr.bf16.mxu0 %v1894_v0  ;;  %1503 = vmatprep.mubr.msk.f32.mxu0 %vm1895_vm0, %v1896_v1  ;;  %v373_v3 = vld [vmem:[#allocation8] sm:$0xff]  ;;  %v374_v4 = vld [vmem:[#allocation8 + $0x8] sm:$0xff]  ;;  %s1898_s24 = smov 64   ;;  %vm398_vm1 = vcmask 261120  }
  0x95   : > { %1506 = vmatprep.subr.mxu1 %v1896_v1  ;;  %1508 = vmatprep.mubr.msk.f32.mxu1 %vm1895_vm0, %v1896_v1  ;;  %v376_v6 = vld [vmem:[#allocation8 + $0x18] sm:$0xff]  ;;  %v1558_v8 = vpack.c.bf16 %v374_v4, %v373_v3  ;;  %v377_v10 = vld [vmem:[#allocation8 + $0x20] sm:$0xff]  ;;  %v378_v11 = vld [vmem:[#allocation8 + $0x28] sm:$0xff]  ;;  %vm400_vm2 = vcmask 523264   ;;  %vm408_vm3 = vcmask 785408   ;;  %s1899_s21 = smov 96  }
  0x96   : > { %391 = vrot.lane.b32.xlu0 %v371_v2, %s1897_s19  ;;  %v372_v7 = vld [vmem:[%s319_s20] sm:$0xff]  ;;  %v1561_v9 = vpack.c.bf16 %v376_v6, %v375_v5  ;;  %v1564_v12 = vpack.c.bf16 %v378_v11, %v377_v10  ;;  %v381_v16 = vld [vmem:[#allocation8 + $0x40] sm:$0xff]  ;;  %v382_v17 = vld [vmem:[#allocation8 + $0x48] sm:$0xff]  ;;  %vm488_vm4 = vcmask 64512   ;;  %p366_p4 = scmp.lt.s32.totalorder %s2038_s16, 1  ;;  %s1900_s18 = smov 88  }
  0x97   : > { %1559 = vmatpush3.bf16.msra.mxu0 %v1558_v8  ;;  %v379_v13 = vld [vmem:[#allocation8 + $0x30] sm:$0xff]  ;;  %v380_v14 = vld [vmem:[#allocation8 + $0x38] sm:$0xff]  ;;  %v1570_v18 = vpack.c.bf16 %v382_v17, %v381_v16  ;;  %s1901_s29 = smov 120   ;;  %s1902_s30 = smov 56   ;;  %vm1163_vm6 = vcmask 130048   ;;  %vm1165_vm7 = vcmask 195584  }
  0x98   : > { %1560 = vmatprep.subr.bf16.mxu0 %v1894_v0  ;;  %v1567_v15 = vpack.c.bf16 %v380_v14, %v379_v13  ;;  %v383_v19 = vld [vmem:[#allocation8 + $0x50] sm:$0xff]  ;;  %v384_v20 = vld [vmem:[#allocation8 + $0x58] sm:$0xff]  ;;  %s367_s25 = scalar_select %p366_p4, %s2038_s16, 1 }
  0x99   : > { %v1573_v21 = vpack.c.bf16 %v384_v20, %v383_v19  ;;  %v370_v23 = vld [vmem:[%s301_s13] sm:$0xff]  ;;  %s1903_s11 = smov 112   ;;  %s1904_s26 = smov 80  }
  0x9a   : > { %395 = vrot.lane.b32.xlu0 %v372_v7, %s1898_s24  ;;  %v2203_v27 = vld [vmem:[%s2348_s4] ss:$0 sm:$0xff]  ;;  %s1425_s7 = sshll.u32 %s367_s25, 3  ;;  %s1905_s27 = smov 72  }
  0x9b   : > { %1562 = vmatpush3.bf16.msra.mxu0 %v1561_v9  ;;  %s369_s10 = scalar_lea.vmem %s2349_s5, %s1425_s7  ;;  %s1906_s13 = smov 104  }
  0x9c   : > { %1563 = vmatprep.subr.bf16.mxu0 %v1894_v0  ;;  %v2223_v33 = vld [vmem:[%s369_s10] sm:$0xff]  ;;  %s1907_s28 = smov 48   ;;  %s1908_s8 = smov 40  }
  0x9d   : > { %vm484_vm5 = vcmp.eq.s32.totalorder %v2223_v33, 0  ;;  %s1909_s15 = smov 16   ;;  %s1910_s20 = smov 8  }
  0x9e   : > { %s1442_s6 = sshll.u32 %s2038_s16, 7  ;;  %s365_s12 = scalar_lea.vmem [#allocation10], %s2162_s1 }
  0x9f   : > { %1565 = vmatpush3.bf16.msra.mxu0 %v1564_v12  ;;  %s2395_s14 = sld [smem:[#allocation22_spill]]  ;;  %s1261_s10 = scalar_lea.sflag [#allocation4], %s2159_s17 }
  0xa0   : > { %1566 = vmatprep.subr.bf16.mxu0 %v1894_v0  ;;  %s1912_s16 = smov [#allocation10]  }
  0xa1   : > { %s1816_s1 = sshll.u32 %s1912_s16, 4  ;;  %s1817_s1 = int_to_ptr.vmem [resolvable:$false] %s1816_s1 }
  0xa3   : > { %1568 = vmatpush3.bf16.msra.mxu0 %v1567_v15 }
  0xa4   : > { %1569 = vmatprep.subr.bf16.mxu0 %v1894_v0 }
  0xa5   : > { %s2299_s9 = scalar_lea.hbm %s2395_s14, %s1442_s6 }
  0xa7   : > { %1571 = vmatpush3.bf16.msra.mxu0 %v1570_v18 }
  0xa8   : > { %1572 = vmatprep.subr.bf16.mxu0 %v1894_v0 }
  0xab   : > { %1574 = vmatpush3.bf16.msra.mxu0 %v1573_v21 }
  0xac   : > { %1575 = vmatprep.subr.bf16.mxu0 %v1894_v0 }
 0x108   : > { %v392_v22 = vpop.permute.xlu0 %391 }
 0x109   : > { %v399_v24 = vsel %vm398_vm1, %v370_v23, %v392_v22 }
 0x10c   : > { %v396_v25 = vpop.permute.xlu0 %395 }
 0x10d   : > { %v401_v26 = vsel %vm400_vm2, %v399_v24, %v396_v25 }
 0x10e   : > { %1504 = vmatmul.mubr.msk.f32.vlgmr.msra.gmra.mrb[0].mxu0 %vm408_vm3, %v401_v26 }
 0x10f   : > { %1554 = vmatprep.mubr.msk.f32.mxu0 %vm1895_vm0, %v1896_v1 }
 0x1e1   : > { %v478_v28 = vpop.f32.mrb[0].mxu0 }
 0x1e2   : > { %v2206_v29 = vadd.f32 %v2203_v27, %v478_v28  ;;  %v1505_v30 = vpop.f32.mrb[1].mxu0  ;;  %v387_v28 = vld [vmem:[#allocation8 + $0x70] sm:$0xff] }
 0x1e3   : > { %v388_v30 = vld [vmem:[#allocation8 + $0x78] sm:$0xff] }
 0x1e4   : > { %486 = vrot.lane.b32.xlu1 %v2206_v29, %s1899_s21  ;;  %v2211_v32 = vmul.f32 0.35355338, %v2206_v29  ;;  %s1274_s21 = sshll.u32 %s365_s12, 4  ;;  %s2301_s21 = int_to_ptr.vmem [resolvable:$true] %s1274_s21 }
 0x1e5   : > { %p1819_p5 = scmp.lt.s32.totalorder %s2301_s21, %s1817_s1 }
 0x256   : > { %v487_v31 = vpop.permute.xlu1 %486 }
 0x257   : > { %1507 = vmatpush3.xpose.msk.msra.mxu1 %vm488_vm4, %v487_v31  ;;  %v1673_v31 = vpack.i.bf16 %v388_v30, %v387_v28 }
 0x258   : > { %1511 = vmatprep.subr.mxu1 %v1896_v1 }
 0x25a   : > { %1509 = vmatmul.mubr.msk.f32.vlgmr.msra.gmra.mrb[0].mxu1 %vm488_vm4, %v2211_v32 }
 0x25b   : > { %1513 = vmatprep.mubr.msk.f32.mxu1 %vm1895_vm0, %v1896_v1 }
 0x32d   : > { %v560_v34 = vpop.f32.mrb[0].mxu1 }
 0x32e   : > { %v564_v35 = vsel %vm484_vm5, -1e+09, %v560_v34  ;;  %v1510_v36 = vpop.f32.mrb[1].mxu1 }
 0x32f   : > { %v565_v37 = vsel %vm488_vm4, %v564_v35, -inf }
 0x330   : > { %566 = vmax.xlane.f32.xlu1 %v565_v37  ;;  %v385_v37 = vld [vmem:[#allocation8 + $0x60] sm:$0xff] }
 0x341   : > { %654 = vrot.lane.b32.xlu1 %v2206_v29, %s1900_s18  ;;  %s1812_s18 = scalar_lea.vmem %s2301_s21, 128 }
 0x342   : > { %p1813_p9 = scmp.ne.s32.totalorder %s2301_s21, %s1812_s18 }
 0x345   : > { %652 = vrot.lane.b32.xlu1 %v2211_v32, %s1901_s29  ;;  %s1818_s29 = scalar_lea.vmem %s1817_s1, 256 }
 0x346   : > { %p1820_p7 = scmp.lt.s32.totalorder %s1818_s29, %s1812_s18 }
 0x348   : > { %p1821_p11 = por %p1820_p7, %p1819_p5 }
 0x3bd   : > { %v567_v38 = vpop.xlane.xlu1 %566 }
 0x3be   : > { %v568_v39 = vsub.f32 %v564_v35, %v567_v38 }
 0x3c0   : > { %v569_v40 = vmul.f32 1.442695, %v568_v39 }
 0x3c1   : > { %v655_v46 = vpop.permute.xlu1 %654 }
 0x3c2   : > { %1678 = vpow2.f32 %v569_v40 }
 0x3c5   : > { %v653_v48 = vpop.permute.xlu1 %652 }
 0x3cc   : > { %v1679_v41 = vpop.eup %1678 }
 0x3cd   : > { %v571_v42 = vsel %vm488_vm4, %v1679_v41, 0.0 }
 0x3ce   : > { %572 = vadd.xlane.f32.xlu0 %v571_v42 }
 0x3e4   : > { %576 = vrot.lane.b32.xlu0 %v2206_v29, %s1898_s24  ;;  %s2394_s24 = sld [smem:[#allocation19_spill]] }
 0x3ea   : > { %p2396_p12 = scmp.ne.s32.totalorder %s2394_s24, 0 }
 0x3ec   : > { %p1814_p6 = pnand %p1813_p9, %p2396_p12 }
 0x3ee   : > { %p1815_p3 = pneg %p1814_p6 }
 0x3f0   : > { %p1822_p0 = pnand %p1821_p11, %p1815_p3 }
 0x45b   : > { %v573_v43 = vpop.xlane.xlu0 %572 }
 0x45c   : > { %1680 = vrcp.f32 %v573_v43 }
 0x45f   : > { %v577_v44 = vpop.permute.xlu0 %576 }
 0x460   : > { %1512 = vmatpush3.msra.mxu1 %v577_v44 }
 0x461   : > { %1516 = vmatprep.subr.mxu1 %v1896_v1 }
 0x466   : > { %v1681_v45 = vpop.eup %1680 }
 0x467   : > { %v575_v47 = vmul.f32 %v1681_v45, %v1679_v41 }
 0x469   : > { %1514 = vmatmul.mubr.msk.f32.vlgmr.msra.gmra.mrb[2].mxu1 %vm488_vm4, %v575_v47 }
 0x46a   : > { %1517 = vmatpush3.xpose.msk.msra.mxu1 %vm488_vm4, %v655_v46  ;;  %1518 = vmatprep.mubr.msk.f32.mxu1 %vm1895_vm0, %v1896_v1 }
 0x46b   : > { %1521 = vmatprep.subr.mxu1 %v1896_v1 }
 0x46d   : > { %1519 = vmatmul.mubr.msk.f32.vlgmr.msra.gmra.mrb[4].mxu1 %vm488_vm4, %v653_v48 }
 0x46e   : > { %1523 = vmatprep.mubr.msk.f32.mxu1 %vm1895_vm0, %v1896_v1 }
 0x53c   : > { %v2243_v49 = vpop.f32.mrb[2].mxu1 }
 0x53d   : > { %v1515_v50 = vpop.f32.mrb[3].mxu1 }
 0x540   : > { %v726_v51 = vpop.f32.mrb[4].mxu1 }
 0x541   : > { %v730_v52 = vsel %vm484_vm5, -1e+09, %v726_v51  ;;  %v1520_v53 = vpop.f32.mrb[5].mxu1 }
 0x542   : > { %v731_v54 = vsel %vm488_vm4, %v730_v52, -inf }
 0x543   : > { %732 = vmax.xlane.f32.xlu0 %v731_v54 }
 0x559   : > { %742 = vrot.lane.b32.xlu0 %v2206_v29, %s1902_s30 }
 0x55d   : > { %818 = vrot.lane.b32.xlu0 %v2211_v32, %s1903_s11 }
 0x5d0   : > { %v733_v55 = vpop.xlane.xlu0 %732 }
 0x5d1   : > { %v734_v56 = vsub.f32 %v730_v52, %v733_v55 }
 0x5d3   : > { %v735_v57 = vmul.f32 1.442695, %v734_v56 }
 0x5d4   : > { %v743_v58 = vpop.permute.xlu0 %742 }
 0x5d5   : > { %1682 = vpow2.f32 %v735_v57  ;;  %1522 = vmatpush3.msra.mxu1 %v743_v58 }
 0x5d6   : > { %1526 = vmatprep.subr.mxu1 %v1896_v1 }
 0x5d8   : > { %v819_v3 = vpop.permute.xlu0 %818 }
 0x5df   : > { %v1683_v59 = vpop.eup %1682 }
 0x5e0   : > { %v737_v60 = vsel %vm488_vm4, %v1683_v59, 0.0 }
 0x5e1   : > { %738 = vadd.xlane.f32.xlu1 %v737_v60 }
 0x5f2   : > { %820 = vrot.lane.b32.xlu1 %v2206_v29, %s1904_s26 }
 0x66e   : > { %v739_v61 = vpop.xlane.xlu1 %738 }
 0x66f   : > { %1684 = vrcp.f32 %v739_v61 }
 0x672   : > { %v821_v2 = vpop.permute.xlu1 %820 }
 0x679   : > { %v1685_v62 = vpop.eup %1684 }
 0x67a   : > { %v741_v63 = vmul.f32 %v1685_v62, %v1683_v59 }
 0x67c   : > { %1524 = vmatmul.mubr.msk.f32.vlgmr.msra.gmra.mrb[6].mxu1 %vm488_vm4, %v741_v63 }
 0x67d   : > { %1527 = vmatpush3.xpose.msk.msra.mxu1 %vm488_vm4, %v821_v2  ;;  %1528 = vmatprep.mubr.msk.f32.mxu1 %vm1895_vm0, %v1896_v1 }
 0x67e   : > { %1531 = vmatprep.subr.mxu1 %v1896_v1 }
 0x680   : > { %1529 = vmatmul.mubr.msk.f32.vlgmr.msra.gmra.mrb[8].mxu1 %vm488_vm4, %v819_v3 }
 0x681   : > { %1533 = vmatprep.mubr.msk.f32.mxu1 %vm1895_vm0, %v1896_v1 }
 0x74f   : > { %v2261_v4 = vpop.f32.mrb[6].mxu1 }
 0x750   : > { %v1525_v5 = vpop.f32.mrb[7].mxu1 }
 0x753   : > { %v892_v6 = vpop.f32.mrb[8].mxu1 }
 0x754   : > { %v896_v7 = vsel %vm484_vm5, -1e+09, %v892_v6  ;;  %v1530_v8 = vpop.f32.mrb[9].mxu1 }
 0x755   : > { %v897_v9 = vsel %vm488_vm4, %v896_v7, -inf }
 0x756   : > { %898 = vmax.xlane.f32.xlu1 %v897_v9 }
 0x767   : > { %986 = vrot.lane.b32.xlu1 %v2206_v29, %s1905_s27 }
 0x76b   : > { %984 = vrot.lane.b32.xlu1 %v2211_v32, %s1906_s13 }
 0x7e3   : > { %v899_v10 = vpop.xlane.xlu1 %898 }
 0x7e4   : > { %v900_v11 = vsub.f32 %v896_v7, %v899_v10 }
 0x7e6   : > { %v901_v12 = vmul.f32 1.442695, %v900_v11 }
 0x7e7   : > { %v987_v18 = vpop.permute.xlu1 %986 }
 0x7e8   : > { %1686 = vpow2.f32 %v901_v12 }
 0x7eb   : > { %v985_v20 = vpop.permute.xlu1 %984 }
 0x7f2   : > { %v1687_v13 = vpop.eup %1686 }
 0x7f3   : > { %v903_v14 = vsel %vm488_vm4, %v1687_v13, 0.0 }
 0x7f4   : > { %904 = vadd.xlane.f32.xlu0 %v903_v14 }
 0x80a   : > { %908 = vrot.lane.b32.xlu0 %v2206_v29, %s1907_s28 }
 0x881   : > { %v905_v15 = vpop.xlane.xlu0 %904 }
 0x882   : > { %1688 = vrcp.f32 %v905_v15 }
 0x885   : > { %v909_v16 = vpop.permute.xlu0 %908 }
 0x886   : > { %1532 = vmatpush3.msra.mxu1 %v909_v16 }
 0x887   : > { %1536 = vmatprep.subr.mxu1 %v1896_v1 }
 0x88c   : > { %v1689_v17 = vpop.eup %1688 }
 0x88d   : > { %v907_v19 = vmul.f32 %v1689_v17, %v1687_v13 }
 0x88f   : > { %1534 = vmatmul.mubr.msk.f32.vlgmr.msra.gmra.mrb[10].mxu1 %vm488_vm4, %v907_v19 }
 0x890   : > { %1537 = vmatpush3.xpose.msk.msra.mxu1 %vm488_vm4, %v987_v18  ;;  %1538 = vmatprep.mubr.msk.f32.mxu1 %vm1895_vm0, %v1896_v1 }
 0x891   : > { %1541 = vmatprep.subr.mxu1 %v1896_v1 }
 0x893   : > { %1539 = vmatmul.mubr.msk.f32.vlgmr.msra.gmra.mrb[12].mxu1 %vm488_vm4, %v985_v20 }
 0x894   : > { %1543 = vmatprep.mubr.msk.f32.mxu1 %vm1895_vm0, %v1896_v1 }
 0x962   : > { %v980_v21 = vpop.f32.mrb[10].mxu1 }
 0x963   : > { %v1535_v22 = vpop.f32.mrb[11].mxu1 }
 0x966   : > { %v1058_v23 = vpop.f32.mrb[12].mxu1 }
 0x967   : > { %v1062_v24 = vsel %vm484_vm5, -1e+09, %v1058_v23  ;;  %v1540_v25 = vpop.f32.mrb[13].mxu1 }
 0x968   : > { %v1063_v26 = vsel %vm488_vm4, %v1062_v24, -inf }
 0x969   : > { %1064 = vmax.xlane.f32.xlu0 %v1063_v26 }
 0x97f   : > { %1074 = vrot.lane.b32.xlu0 %v2206_v29, %s1908_s8  ;;  %v386_v29 = vld [vmem:[#allocation8 + $0x68] sm:$0xff] }
 0x980   : > { %v1668_v38 = vpack.i.bf16 %v386_v29, %v385_v37 }
 0x983   : > { %1674 = vrot.lane.b32.xlu0 %v1673_v31, %s1897_s19 }
 0x987   : > { %1155 = vrot.lane.b32.xlu0 %v980_v21, %s1909_s15 }
 0x98b   : > { %1183 = vrot.lane.b32.xlu0 %v2203_v27, %s1897_s19 }
 0x9f6   : > { %v1065_v1 = vpop.xlane.xlu0 %1064 }
 0x9f7   : > { %v1066_v32 = vsub.f32 %v1062_v24, %v1065_v1 }
 0x9f9   : > { %v1067_v33 = vmul.f32 1.442695, %v1066_v32 }
 0x9fa   : > { %v1075_v34 = vpop.permute.xlu0 %1074 }
 0x9fb   : > { %1690 = vpow2.f32 %v1067_v33  ;;  %1542 = vmatpush3.msra.mxu1 %v1075_v34 }
 0x9fe   : > { %v1675_v27 = vpop.permute.xlu0 %1674 }
 0x9ff   : > { %v1677_v41 = vunpack.i.h.bf16 %v1675_v27  ;;  %v1676_v42 = vunpack.i.l.bf16 %v1675_v27 }
 0xa01   : > { %v1579_v46 = vpack.c.bf16 %v1677_v41, %v1676_v42 }
 0xa02   : > { %v1156_v54 = vpop.permute.xlu0 %1155 }
 0xa05   : > { %v1691_v35 = vpop.eup %1690 }
 0xa06   : > { %v1069_v36 = vsel %vm488_vm4, %v1691_v35, 0.0  ;;  %v1184_v57 = vpop.permute.xlu0 %1183 }
 0xa07   : > { %1070 = vadd.xlane.f32.xlu1 %v1069_v36 }
 0xa18   : > { %1669 = vrot.lane.b32.xlu1 %v1668_v38, %s1897_s19  ;;  %s1911_s19 = smov 24  }
 0xa1c   : > { %1151 = vrot.lane.b32.xlu1 %v2261_v4, %s1910_s20 }
 0xa94   : > { %v1071_v39 = vpop.xlane.xlu1 %1070 }
 0xa95   : > { %1692 = vrcp.f32 %v1071_v39 }
 0xa98   : > { %v1670_v40 = vpop.permute.xlu1 %1669 }
 0xa99   : > { %v1672_v43 = vunpack.i.h.bf16 %v1670_v40  ;;  %v1671_v44 = vunpack.i.l.bf16 %v1670_v40 }
 0xa9b   : > { %v1576_v45 = vpack.c.bf16 %v1672_v43, %v1671_v44 }
 0xa9c   : > { %v1152_v52 = vpop.permute.xlu1 %1151 }
 0xa9d   : > { %1577 = vmatpush3.bf16.msra.mxu0 %v1576_v45  ;;  %v1162_v53 = vsel %vm488_vm4, %v2243_v49, %v1152_v52 }
 0xa9e   : > { %1578 = vmatprep.subr.bf16.mxu0 %v1894_v0  ;;  %v1164_v0 = vsel %vm1163_vm6, %v1162_v53, %v1156_v54 }
 0xa9f   : > { %v1693_v47 = vpop.eup %1692 }
 0xaa0   : > { %v1073_v48 = vmul.f32 %v1693_v47, %v1691_v35 }
 0xaa1   : > { %1580 = vmatpush3.bf16.msra.mxu0 %v1579_v46 }
 0xaa2   : > { %1544 = vmatmul.mubr.msk.f32.vlgmr.msra.gmra.mrb[14].mxu1 %vm488_vm4, %v1073_v48 }
 0xb75   : > { %v1146_v50 = vpop.f32.mrb[14].mxu1 }
 0xb76   : > { %1159 = vrot.lane.b32.xlu1 %v1146_v50, %s1911_s19  ;;  %v1545_v51 = vpop.f32.mrb[15].mxu1 }
 0xbe8   : > { %v1160_v55 = vpop.permute.xlu1 %1159 }
 0xbe9   : > { %v1166_v56 = vsel %vm1165_vm7, %v1164_v0, %v1160_v55 }
 0xbea   : > { %1555 = vmatmul.mubr.msk.f32.vlgmr.msra.gmra.mrb[2].mxu0 %vm398_vm1, %v1166_v56 }
 0xcbd   : > { %v1255_v58 = vpop.f32.mrb[2].mxu0 }
 0xcbe   : > { %v1256_v59 = vadd.f32 %v1255_v58, %v1184_v57  ;;  %v1556_v60 = vpop.f32.mrb[3].mxu0 }
 0xcc0   : > { %1259 = vst.msk [vmem:[%s365_s12] sm:$0xff] %vm398_vm1, %v1256_v59 }
 0xcc1   : > { %1825 = shalt.err (!%p1822_p0)
}
 0xcc2   : > { %s1826_s17 = scalar_lea.hbm %s2299_s9, 128  ;;  %s1830_s26 = scalar_lea.hbm %s2395_s14, 256 }
 0xcc3   : > { %p1827_p13 = scmp.ne.s32.totalorder %s2299_s9, %s1826_s17  ;;  %p1831_p1 = scmp.lt.u32.totalorder %s2299_s9, %s2395_s14 }
 0xcc4   : > { %p1832_p2 = scmp.lt.u32.totalorder %s1830_s26, %s1826_s17  ;;  %p1834_p9 = scmp.lt.u32.totalorder %s1826_s17, %s2299_s9 }
 0xcc5   : > { %p1828_p10 = pnand %p1827_p13, %p2396_p12 }
 0xcc6   : > { %p1833_p4 = por %p1832_p2, %p1831_p1 }
 0xcc7   : > { %p1829_p8 = pneg %p1828_p10 }
 0xcc8   : > { %p1835_p6 = por %p1834_p9, %p1833_p4 }
 0xcca   : > { %p1836_p3 = pnand %p1835_p6, %p1829_p8 }
 0xccc   : > { %1839 = shalt.err (!%p1836_p3)
}
 0xccd   : > { %1591 = dma.vmem_to_hbm [thread:$0]  (%p2396_p12), %s2301_s21, 128, %s2299_s9, %s1261_s10  }
 0xcce PF: > { %s2397_s28 = sld [smem:[#allocation15_spill]]  ;;  %s2398_s8 = sld [smem:[#allocation20_spill]] }
 0xccf   : > { %s2399_s15 = sld [smem:[#allocation16_spill]] }
 0xcd4   : > { %s1286_s20 = sand.u32 1, %s2397_s28   ;;  %p2400_p5 = scmp.ne.s32.totalorder %s2398_s8, 0 }
 0xcd5   : > { %p2401_p7 = scmp.ge.s32.totalorder %s2399_s15, 2  ;;  %s1287_s19 = scalar_lea.sflag [#allocation4], %s1286_s20 }
 0xcd7   : > { %p1608_p11 = pnand %p2401_p7, %p2400_p5 }
 0xcd9   : > { %1869 = dma.done.wait (!%p1608_p11), %s1287_s19, 128  }
 0xcda   : > { %1871 = vsyncadd (!%p1608_p11), %s1287_s19, 4294967168  ;;  %s2402_s24 = sld [smem:[#allocation17_spill]]  ;;  %s2403_s6 = sld [smem:[#allocation18_spill]] }
 0xcdb   : > { %s2404_s21 = smov %s1878_s22  ;;  %s2405_s22 = smov %s1882_s23 }
 0xce0   : > { %p23_p0 = scmp.ge.s32.totalorder %s2402_s24, 4   ;;  %s2406_s23 = smov %s2403_s6 }
 0xce2   :  { %25 = sbr.rel (!%p23_p0) target bundleno = 11 (0xb), region = 120 }
 0xce9   :  { %1292 = vsyncpa [#allocation3], 1 }
 0xcea   :  { %1294 = vsyncpa [#allocation3 + $0x1], 1 }
 0xceb   :  { %1295 = vsyncpa [#allocation6], 1 }
 0xcec   :  { %1297 = vsyncpa [#allocation6 + $0x1], 1 }
 0xced   :  { %1298 = vsyncpa [#allocation9], 1 }
 0xcee   :  { %1299 = vsyncpa [#allocation4], 1 }
 0xcef   :  { %1301 = vsyncpa [#allocation4 + $0x1], 1 }

</bundles_post_ra>
